<compile_context>
chip_gen: v7x
topology: tpu7x:2x2x1
jax: 0.10.0
libtpu: 0.0.40
codegen_flags: <defaults>
</compile_context>

<pallas_src>
import functools

import jax
import jax.numpy as jnp
from jax.experimental import pallas as pl
from jax.experimental.pallas import tpu as pltpu

_LANES = 128


# ----------------------------------------------------------------------------
# Pallas kernel: fused asymmetric-weighted squared error + mean reduction.
#   p_ref, t_ref : (block_rows, 128) tiles of predictions / targets
#   o_ref        : (1, 1) resident accumulator block (same block every step)
# ----------------------------------------------------------------------------
def _asym_l2_kernel(p_ref, t_ref, o_ref, *,
                    block_rows, total_rows, inv_n, nonzero_cost, zero_cost):
    i = pl.program_id(0)

    @pl.when(i == 0)
    def _init():
        o_ref[...] = jnp.zeros_like(o_ref)

    p = p_ref[...].astype(jnp.float32)
    t = t_ref[...].astype(jnp.float32)

    diff = p - t
    sq = diff * diff

    # weight = nonzero_cost if t != 0 else (zero_cost if p != 0 else 0)
    w = jnp.where(t != 0.0,
                  jnp.float32(nonzero_cost),
                  jnp.where(p != 0.0, jnp.float32(zero_cost), jnp.float32(0.0)))

    # Mask rows past the real extent (garbage in a ragged last block).
    row = jax.lax.broadcasted_iota(jnp.int32, p.shape, 0) + i * block_rows
    contrib = jnp.where(row < total_rows, w * sq, 0.0)

    o_ref[...] += jnp.sum(contrib)

    @pl.when(i == pl.num_programs(0) - 1)
    def _finalize():
        o_ref[...] = o_ref[...] * jnp.float32(inv_n)


# ----------------------------------------------------------------------------
# Wrapper: matches AsymmetricL2Loss.forward (eval semantics, l1_weight=0).
# ----------------------------------------------------------------------------
def asymmetric_l2_loss(predictions, targets, nonzero_cost=2.0, zero_cost=1.0,
                       l1_weight=0, block_rows_max=2048):
    assert predictions.shape == targets.shape, (predictions.shape, targets.shape)
    n = int(predictions.size)

    p = predictions.reshape(-1)
    t = targets.reshape(-1)

    rows = pl.cdiv(n, _LANES)
    n_pad = rows * _LANES
    if n_pad != n:
        # Zero padding is exact here: padded elements have pred == target == 0,
        # so their asymmetric weight is 0 and they contribute nothing to the sum.
        p = jnp.pad(p, (0, n_pad - n))
        t = jnp.pad(t, (0, n_pad - n))

    p2 = p.reshape(rows, _LANES)
    t2 = t.reshape(rows, _LANES)

    if rows <= block_rows_max:
        # Single block equal to the full array (allowed even if rows % 8 != 0).
        block_rows = rows
        grid = 1
    else:
        block_rows = block_rows_max          # multiple of 8; ~1 MiB f32 per tile
        grid = pl.cdiv(rows, block_rows)     # ragged last block masked in-kernel

    kernel = functools.partial(
        _asym_l2_kernel,
        block_rows=block_rows,
        total_rows=rows,
        inv_n=1.0 / n,
        nonzero_cost=float(nonzero_cost),
        zero_cost=float(zero_cost),
    )

    out = pl.pallas_call(
        kernel,
        out_shape=jax.ShapeDtypeStruct((1, 1), jnp.float32),
        grid=(grid,),
        in_specs=[
            pl.BlockSpec((block_rows, _LANES), lambda i: (i, 0)),
            pl.BlockSpec((block_rows, _LANES), lambda i: (i, 0)),
        ],
        out_specs=pl.BlockSpec((1, 1), lambda i: (0, 0)),
        compiler_params=pltpu.CompilerParams(
            dimension_semantics=("arbitrary",),   # reduction axis (carried output)
        ),
    )(p2, t2)

    loss = out[0, 0]

    # TODO(synk): l1_weight != 0 branch not implemented — it requires the
    # encoder/decoder parameter lists and the PyTorch source references an
    # undefined `reco_loss`; default l1_weight=0 path is fully covered.
    return loss


# Pure-JAX reference for validation.
def _reference_loss(p, t, nonzero_cost=2.0, zero_cost=1.0):
    sq = (p - t) ** 2
    nonzero = nonzero_cost * jnp.where(t != 0, sq, 0.0)
    zero = zero_cost * jnp.where(t == 0, jnp.where(p != 0, sq, 0.0), 0.0)
    return jnp.mean(zero + nonzero)


if __name__ == "__main__":
    key = jax.random.PRNGKey(0)
    k1, k2, k3, k4 = jax.random.split(key, 4)

    # Primary small case consistent with a reconstruction loss over (B,C,H,W).
    shape = (2, 4, 16, 16)
    preds = jax.random.normal(k1, shape, jnp.float32)
    targs = jax.random.normal(k2, shape, jnp.float32)
    # Sparsify so every branch of the asymmetric weighting is exercised.
    targs = jnp.where(jax.random.bernoulli(k3, 0.5, shape), targs, 0.0)
    preds = jnp.where(jax.random.bernoulli(k4, 0.9, shape), preds, 0.0)

    loss_fn = jax.jit(asymmetric_l2_loss)
    loss = jax.block_until_ready(loss_fn(preds, targs))
    ref = _reference_loss(preds, targs)
    assert loss.shape == (), loss.shape
    assert bool(jnp.isfinite(loss))
    assert jnp.allclose(loss, ref, rtol=1e-5, atol=1e-6), (loss, ref)

    # Ragged / multi-block case: numel not a multiple of 128 and more rows than
    # one block, exercising the lane padding and the masked partial last block.
    shape2 = (3, 7, 333)   # numel = 6993
    p2 = jax.random.normal(k1, shape2, jnp.float32)
    t2 = jnp.where(jax.random.bernoulli(k2, 0.4, shape2),
                   jax.random.normal(k3, shape2, jnp.float32), 0.0)
    loss2_fn = jax.jit(functools.partial(asymmetric_l2_loss, block_rows_max=16))
    loss2 = jax.block_until_ready(loss2_fn(p2, t2))
    ref2 = _reference_loss(p2, t2)
    assert jnp.allclose(loss2, ref2, rtol=1e-5, atol=1e-6), (loss2, ref2)

    print("KERNEL_OK")
</pallas_src>

<mosaic_0001>
module attributes {stable_mosaic.version = 11 : i64} {
  func.func @_asym_l2_kernel(%arg0: i32, %arg1: memref<16x128xf32, #tpu.memory_space<vmem>>, %arg2: memref<16x128xf32, #tpu.memory_space<vmem>>, %arg3: memref<1x1xf32, #tpu.memory_space<vmem>>) attributes {dimension_semantics = [#tpu.dimension_semantics<arbitrary>], iteration_bounds = array<i64: 1>, scalar_prefetch = 0 : i64, scratch_operands = 0 : i64, tpu.core_type = #tpu.core_type<tc>, window_params = [{transform_indices = @transform_0, window_bounds = array<i64: 16, 128>}, {transform_indices = @transform_1, window_bounds = array<i64: 16, 128>}, {pipeline_mode = #tpu.pipeline_mode<synchronous>, transform_indices = @transform_2, window_bounds = array<i64: 1, 1>}]} {
    %c0_i32 = arith.constant 0 : i32
    %0 = arith.cmpi eq, %arg0, %c0_i32 : i32
    %1 = arith.extui %0 : i1 to i32
    %c0_i32_0 = arith.constant 0 : i32
    %2 = arith.cmpi ne, %1, %c0_i32_0 : i32
    scf.if %2 {
      %cst_17 = arith.constant 0.000000e+00 : f32
      %36 = vector.broadcast %cst_17 : f32 to vector<1x1xf32>
      %c0_18 = arith.constant 0 : index
      %c0_19 = arith.constant 0 : index
      %37 = vector.load %arg3[%c0_18, %c0_19] : memref<1x1xf32, #tpu.memory_space<vmem>>, vector<1x1xf32>
      tpu.vector_store %arg3[%c0_18, %c0_19], %36 {strides = array<i32>} : memref<1x1xf32, #tpu.memory_space<vmem>>, vector<1x1xf32>,
    } else {
    }
    %c0 = arith.constant 0 : index
    %c0_1 = arith.constant 0 : index
    %3 = vector.load %arg1[%c0, %c0_1] : memref<16x128xf32, #tpu.memory_space<vmem>>, vector<16x128xf32>
    %c0_2 = arith.constant 0 : index
    %c0_3 = arith.constant 0 : index
    %4 = vector.load %arg2[%c0_2, %c0_3] : memref<16x128xf32, #tpu.memory_space<vmem>>, vector<16x128xf32>
    %5 = arith.subf %3, %4 : vector<16x128xf32>
    %6 = arith.mulf %5, %5 : vector<16x128xf32>
    %cst = arith.constant 0.000000e+00 : f32
    %7 = vector.broadcast %cst : f32 to vector<16x128xf32>
    %8 = arith.cmpf one, %4, %7 : vector<16x128xf32>
    %cst_4 = arith.constant 0.000000e+00 : f32
    %9 = vector.broadcast %cst_4 : f32 to vector<16x128xf32>
    %10 = arith.cmpf one, %3, %9 : vector<16x128xf32>
    %cst_5 = arith.constant 1.000000e+00 : f32
    %cst_6 = arith.constant 0.000000e+00 : f32
    %11 = vector.broadcast %cst_5 : f32 to vector<16x128xf32>
    %12 = vector.broadcast %cst_6 : f32 to vector<16x128xf32>
    %13 = arith.select %10, %11, %12 : vector<16x128xi1>, vector<16x128xf32>
    %cst_7 = arith.constant 2.000000e+00 : f32
    %14 = vector.broadcast %cst_7 : f32 to vector<16x128xf32>
    %15 = arith.select %8, %14, %13 : vector<16x128xi1>, vector<16x128xf32>
    %16 = tpu.iota {dimensions = array<i32: 0>} : vector<16x128xi32>
    %c16_i32 = arith.constant 16 : i32
    %17 = arith.muli %arg0, %c16_i32 : i32
    %18 = vector.broadcast %17 : i32 to vector<16x128xi32>
    %19 = arith.addi %16, %18 : vector<16x128xi32>
    %c16_i32_8 = arith.constant 16 : i32
    %20 = vector.broadcast %c16_i32_8 : i32 to vector<16x128xi32>
    %21 = arith.cmpi slt, %19, %20 : vector<16x128xi32>
    %22 = arith.mulf %15, %6 : vector<16x128xf32>
    %cst_9 = arith.constant 0.000000e+00 : f32
    %23 = vector.broadcast %cst_9 : f32 to vector<16x128xf32>
    %24 = arith.select %21, %22, %23 : vector<16x128xi1>, vector<16x128xf32>
    %c0_10 = arith.constant 0 : index
    %c0_11 = arith.constant 0 : index
    %25 = vector.load %arg3[%c0_10, %c0_11] : memref<1x1xf32, #tpu.memory_space<vmem>>, vector<1x1xf32>
    %26 = vector.shape_cast %24 : vector<16x128xf32> to vector<1x16x128xf32>
    %cst_12 = arith.constant dense<0.000000e+00> : vector<1xf32>
    %27 = vector.multi_reduction <add>, %26, %cst_12 [1, 2] : vector<1x16x128xf32> to vector<1xf32>
    %28 = vector.shape_cast %27 : vector<1xf32> to vector<1x1x1xf32>
    %29 = vector.extract %28[0, 0, 0] : f32 from vector<1x1x1xf32>
    %30 = vector.broadcast %29 : f32 to vector<1x1xf32>
    %31 = arith.addf %25, %30 : vector<1x1xf32>
    %c0_13 = arith.constant 0 : index
    %c0_14 = arith.constant 0 : index
    %32 = vector.load %arg3[%c0_13, %c0_14] : memref<1x1xf32, #tpu.memory_space<vmem>>, vector<1x1xf32>
    tpu.vector_store %arg3[%c0_13, %c0_14], %31 {strides = array<i32>} : memref<1x1xf32, #tpu.memory_space<vmem>>, vector<1x1xf32>,
    %c0_i32_15 = arith.constant 0 : i32
    %33 = arith.cmpi eq, %arg0, %c0_i32_15 : i32
    %34 = arith.extui %33 : i1 to i32
    %c0_i32_16 = arith.constant 0 : i32
    %35 = arith.cmpi ne, %34, %c0_i32_16 : i32
    scf.if %35 {
      %c0_17 = arith.constant 0 : index
      %c0_18 = arith.constant 0 : index
      %36 = vector.load %arg3[%c0_17, %c0_18] : memref<1x1xf32, #tpu.memory_space<vmem>>, vector<1x1xf32>
      %cst_19 = arith.constant 4.8828125E-4 : f32
      %37 = vector.broadcast %cst_19 : f32 to vector<1x1xf32>
      %38 = arith.mulf %36, %37 : vector<1x1xf32>
      %c0_20 = arith.constant 0 : index
      %c0_21 = arith.constant 0 : index
      %39 = vector.load %arg3[%c0_20, %c0_21] : memref<1x1xf32, #tpu.memory_space<vmem>>, vector<1x1xf32>
      tpu.vector_store %arg3[%c0_20, %c0_21], %38 {strides = array<i32>} : memref<1x1xf32, #tpu.memory_space<vmem>>, vector<1x1xf32>,
    } else {
    }
    return
  }
  func.func @transform_0(%arg0: i32) -> (i32, i32) {
    %c0_i32 = arith.constant 0 : i32
    %c0_i32_0 = arith.constant 0 : i32
    return %arg0, %c0_i32 : i32, i32
  }
  func.func @transform_1(%arg0: i32) -> (i32, i32) {
    %c0_i32 = arith.constant 0 : i32
    %c0_i32_0 = arith.constant 0 : i32
    return %arg0, %c0_i32 : i32, i32
  }
  func.func @transform_2(%arg0: i32) -> (i32, i32) {
    %c0_i32 = arith.constant 0 : i32
    %c0_i32_0 = arith.constant 0 : i32
    %c0_i32_1 = arith.constant 0 : i32
    return %c0_i32, %c0_i32_0 : i32, i32
  }
}

</mosaic_0001>

<bundles_post_ra>
// kernel: asymmetric_l2_loss.1
= control target key start
LH: loop header
LB: loop body
LE: loop exit
PB: predicated region body
PF: predicated region fallthrough
CT: control target
= control target key end

     0   :  { %s154_s0 = inlined_call_operand.vmem [shape: f32[16,128], index: 0, kind: input, shape index: {}]   ;;  %s155_s1 = inlined_call_operand.vmem [shape: f32[16,128], index: 1, kind: input, shape index: {}]   ;;  %s156_s2 = inlined_call_operand.hbm [shape: f32[1,1], index: 2, kind: output, shape index: {}]  }
   0x1   :  { %v18_v0 = vld [vmem:[%s154_s0] sm:$0xff]  ;;  %v19_v1 = vld [vmem:[%s154_s0 + $0x8] sm:$0xff] }
   0x2   :  { %v20_v2 = vld [vmem:[%s155_s1] sm:$0xff]  ;;  %v21_v3 = vld [vmem:[%s155_s1 + $0x8] sm:$0xff]  ;;  %vm28_vm1 = vcmp.ne.f32.partialorder %v18_v0, 0.0  ;;  %vm29_vm2 = vcmp.ne.f32.partialorder %v19_v1, 0.0 }
   0x3   :  { %v22_v4 = vsub.f32 %v18_v0, %v20_v2  ;;  %vm26_vm0 = vcmp.ne.f32.partialorder %v20_v2, 0.0 }
   0x4   :  { %7 = vsyncpa [#allocation3], 0  ;;  %v23_v5 = vsub.f32 %v19_v1, %v21_v3  ;;  %vm27_vm3 = vcmp.ne.f32.partialorder %v21_v3, 0.0  ;;  %v110_v6 = vmov 0.0   ;;  %vm16_vm4 = vcmask 0   ;;  %s111_s1 = smov [#allocation2]  }
   0x5   :  { %v30_v7 = vsel %vm28_vm1, 1.0, %v110_v6  ;;  %v31_v8 = vsel %vm29_vm2, 1.0, %v110_v6  ;;  %v24_v9 = vmul.f32 %v22_v4, %v22_v4  ;;  %17 = vst.msk [vmem:[#allocation2] sm:$0x1] %vm16_vm4, %v110_v6  ;;  %s74_s17 = sshll.u32 %s111_s1, 4  ;;  %s75_s17 = int_to_ptr.vmem [resolvable:$true] %s74_s17 }
   0x6   :  { %v32_v10 = vsel %vm26_vm0, 2.0, %v30_v7  ;;  %v33_v11 = vsel %vm27_vm3, 2.0, %v31_v8  ;;  %v25_v12 = vmul.f32 %v23_v5, %v23_v5  ;;  %s86_s18 = scalar_lea.vmem %s75_s17, 16  ;;  %s90_s19 = scalar_lea.vmem %s75_s17, 32 }
   0x7   :  { %v43_v13 = vmul.f32 %v32_v10, %v24_v9  ;;  %p87_p0 = scmp.ne.s32.totalorder %s75_s17, %s86_s18  ;;  %p91_p1 = scmp.lt.s32.totalorder %s75_s17, %s75_s17 }
   0x8   :  { %v44_v14 = vmul.f32 %v33_v11, %v25_v12  ;;  %p92_p2 = scmp.lt.s32.totalorder %s90_s19, %s86_s18 }
   0xa   :  { %v48_v15 = vadd.f32 %v44_v14, %v43_v13  ;;  %p93_p3 = por %p92_p2, %p91_p1 }
   0xc   :  { %49 = vadd.xlane.f32.xlu0 %v48_v15  ;;  %v47_v23 = vld [vmem:[#allocation2] sm:$0x1]  ;;  %p94_p4 = pnand %p93_p3, %p87_p0 }
  0x99   :  { %v50_v16 = vpop.xlane.xlu0 %49 }
  0x9a   :  { %v51_v17 = vrot.slane %v50_v16, 4 }
  0x9c   :  { %v52_v18 = vadd.f32 %v51_v17, %v50_v16 }
  0x9e   :  { %v53_v19 = vrot.slane %v52_v18, 2 }
  0xa0   :  { %v54_v20 = vadd.f32 %v53_v19, %v52_v18 }
  0xa2   :  { %v55_v21 = vrot.slane %v54_v20, 1 }
  0xa4   :  { %v56_v22 = vadd.f32 %v55_v21, %v54_v20 }
  0xa6   :  { %82 = vpush %v56_v22 }
  0xd7   :  { %s83_s0 = spop %82 }
  0xd8   :  { %v58_v24 = vstv %s83_s0 }
  0xd9   :  { %v59_v25 = vadd.f32 %v58_v24, %v47_v23 }
  0xdb   :  { %61 = vst.msk [vmem:[#allocation2] sm:$0x1] %vm16_vm4, %v59_v25 }
  0xe2   :  { %v65_v26 = vld [vmem:[#allocation2] sm:$0x1] }
  0xe3   :  { %v66_v27 = vmul.f32 0.00048828125, %v65_v26 }
  0xe5   :  { %67 = vst.msk [vmem:[#allocation2] sm:$0x1] %vm16_vm4, %v66_v27 }
  0xe6   :  { %97 = shalt.err (!%p94_p4)
}
  0xe7   :  { %s98_s22 = scalar_lea.hbm %s156_s2, 16 }
  0xe8   :  { %p99_p5 = scmp.ne.s32.totalorder %s156_s2, %s98_s22  ;;  %p102_p6 = scmp.lt.u32.totalorder %s98_s22, %s156_s2 }
  0xea   :  { %p104_p7 = pnand %p102_p6, %p99_p5 }
  0xec   :  { %107 = shalt.err (!%p104_p7)
}
  0xed   :  { %77 = dma.vmem_to_hbm [thread:$0]  %s75_s17, 16, %s156_s2, [#allocation3]  }
  0xee   :  { %108 = dma.done.wait [#allocation3], 16  }
  0xef   :  { %109 = vsyncadd [#allocation3], 4294967280 }
  0xf0   :  { %81 = vsyncpa [#allocation3], 1 }

</bundles_post_ra>
